<compile_context>
chip_gen: v7x
topology: tpu7x:2x2x1
jax: 0.10.0
libtpu: 0.0.40
codegen_flags: <defaults>
</compile_context>

<pallas_src>
import jax
import jax.numpy as jnp
import numpy as np
from jax.experimental import pallas as pl
from jax.experimental.pallas import tpu as pltpu

_LANE = 128
_MIN_TILE = 8 * _LANE        # 1024 faces: smallest (8,128)-dense tile
_MAX_TILE = 8192             # 64 sublane rows of faces per grid step
_EPS_SQ = 1e-24              # (F.normalize eps = 1e-12)**2, on the squared norm


# ---------- 3-vector helpers operating on tuples of (TFb, 128) slabs --------

def _sub3(a, b):
    return (a[0] - b[0], a[1] - b[1], a[2] - b[2])


def _dot3(a, b):
    return a[0] * b[0] + a[1] * b[1] + a[2] * b[2]


def _normalize3(a):
    inv = jax.lax.rsqrt(jnp.maximum(_dot3(a, a), _EPS_SQ))   # EUP rsqrt
    return (a[0] * inv, a[1] * inv, a[2] * inv)


def _cross3(a, b):
    return (a[1] * b[2] - a[2] * b[1],
            a[2] * b[0] - a[0] * b[2],
            a[0] * b[1] - a[1] * b[0])


# ------------------------------- Pallas kernel ------------------------------

def _nvl_kernel(og_ref, gg_ref, m_ref, out_ref):
    """One (batch, face-tile) grid step; all operands are (TFb, 128) dense.

    og_ref : (1, 3, 3, TFb, 128)  coord_out gathered: [corner, xyz, fblk, lane]
    gg_ref : (1, 3, 3, TFb, 128)  coord_gt  gathered
    m_ref  : (1, TFb, 128)        precomputed 3-corner validity product
    out_ref: (1, 3, TFb, 128)     rows = (cos1, cos2, cos3)
    """
    def corner(ref, c):
        # 3-vector as a tuple of three fully dense (TFb, 128) slabs.
        return (ref[0, c, 0], ref[0, c, 1], ref[0, c, 2])

    o0, o1, o2 = corner(og_ref, 0), corner(og_ref, 1), corner(og_ref, 2)
    g0, g1, g2 = corner(gg_ref, 0), corner(gg_ref, 1), corner(gg_ref, 2)

    v1o = _normalize3(_sub3(o1, o0))
    v2o = _normalize3(_sub3(o2, o0))
    v3o = _normalize3(_sub3(o2, o1))

    v1g = _normalize3(_sub3(g1, g0))
    v2g = _normalize3(_sub3(g2, g0))
    n_gt = _normalize3(_cross3(v1g, v2g))

    mask = m_ref[0]

    out_ref[0, 0] = jnp.abs(_dot3(v1o, n_gt)) * mask
    out_ref[0, 1] = jnp.abs(_dot3(v2o, n_gt)) * mask
    out_ref[0, 2] = jnp.abs(_dot3(v3o, n_gt)) * mask


# --------------------------------- wrapper ----------------------------------

def _round_up(x, m):
    return ((x + m - 1) // m) * m


def _face_tile(nf, b):
    """Faces per grid step: multiple of 1024, as large as sensible."""
    tile = min(_MAX_TILE, _round_up(nf, _MIN_TILE))
    # v7x: keep >= 2 parallel grid steps when the batch axis can't provide them.
    if b < 2 and nf > _MIN_TILE:
        tile = min(tile, _round_up((nf + 1) // 2, _MIN_TILE))
    return tile


def normal_vector_loss(coord_out, coord_gt, valid, face):
    """NormalVectorLoss.forward — returns (B, 3*F, 1) float32."""
    coord_out = coord_out.astype(jnp.float32)
    coord_gt = coord_gt.astype(jnp.float32)
    valid = valid.astype(jnp.float32)
    face = jnp.asarray(face, jnp.int32)

    b = coord_out.shape[0]
    nf = face.shape[0]

    tile = _face_tile(nf, b)           # faces per grid step (multiple of 1024)
    fp = _round_up(nf, tile)           # padded face count
    pad = fp - nf
    fb = fp // _LANE                   # 128-lane face blocks
    tfb = tile // _LANE                # sublane rows per grid step (mult. of 8)
    n_face_steps = fp // tile

    def gather_coord(coord):
        # (B, V, 3) -> (B, 3corner, 3xyz, Fb, 128); faces land lane-dense
        # directly out of the gather (no big post-gather relayout).
        coord_t = jnp.transpose(coord, (0, 2, 1))                 # (B, 3, V)
        g = jnp.stack([coord_t[:, :, face[:, c]] for c in range(3)], axis=1)
        g = jnp.pad(g, ((0, 0), (0, 0), (0, 0), (0, pad)))
        return g.reshape(b, 3, 3, fb, _LANE)

    og = gather_coord(coord_out)
    gg = gather_coord(coord_gt)

    # Precompute the 3-corner validity product once (fuses into the gather).
    vflat = valid[..., 0]                                          # (B, V)
    mask = vflat[:, face[:, 0]] * vflat[:, face[:, 1]] * vflat[:, face[:, 2]]
    mask = jnp.pad(mask, ((0, 0), (0, pad))).reshape(b, fb, _LANE)

    out = pl.pallas_call(
        _nvl_kernel,
        out_shape=jax.ShapeDtypeStruct((b, 3, fb, _LANE), jnp.float32),
        grid_spec=pltpu.PrefetchScalarGridSpec(
            num_scalar_prefetch=0,
            grid=(b, n_face_steps),
            in_specs=[
                pl.BlockSpec((1, 3, 3, tfb, _LANE), lambda i, j: (i, 0, 0, j, 0)),
                pl.BlockSpec((1, 3, 3, tfb, _LANE), lambda i, j: (i, 0, 0, j, 0)),
                pl.BlockSpec((1, tfb, _LANE), lambda i, j: (i, j, 0)),
            ],
            out_specs=pl.BlockSpec((1, 3, tfb, _LANE), lambda i, j: (i, 0, j, 0)),
        ),
        compiler_params=pltpu.CompilerParams(
            dimension_semantics=("parallel", "parallel")),
    )(og, gg, mask)

    # (B, 3, Fb, 128) -> (B, 3, Fp) view -> drop face padding -> (B, 3F, 1).
    # Row-major reshape reproduces torch.cat((cos1, cos2, cos3), dim=1).
    # TODO(synk): if downstream only takes .mean(), emit per-tile partial sums
    # from the kernel instead of the full (B, 3F, 1) tensor.
    return out.reshape(b, 3, fp)[:, :, :nf].reshape(b, 3 * nf, 1)


# ----------------------------- pure-JAX reference ---------------------------

def _reference(coord_out, coord_gt, valid, face):
    def norm(x):
        n = jnp.linalg.norm(x, axis=2, keepdims=True)
        return x / jnp.maximum(n, 1e-12)

    f0, f1, f2 = face[:, 0], face[:, 1], face[:, 2]
    v1o = norm(coord_out[:, f1] - coord_out[:, f0])
    v2o = norm(coord_out[:, f2] - coord_out[:, f0])
    v3o = norm(coord_out[:, f2] - coord_out[:, f1])
    v1g = norm(coord_gt[:, f1] - coord_gt[:, f0])
    v2g = norm(coord_gt[:, f2] - coord_gt[:, f0])
    n_gt = norm(jnp.cross(v1g, v2g, axis=2))
    mask = valid[:, f0] * valid[:, f1] * valid[:, f2]
    cos1 = jnp.abs(jnp.sum(v1o * n_gt, axis=2, keepdims=True)) * mask
    cos2 = jnp.abs(jnp.sum(v2o * n_gt, axis=2, keepdims=True)) * mask
    cos3 = jnp.abs(jnp.sum(v3o * n_gt, axis=2, keepdims=True)) * mask
    return jnp.concatenate([cos1, cos2, cos3], axis=1)


if __name__ == "__main__":
    key = jax.random.PRNGKey(0)
    k1, k2, k3 = jax.random.split(key, 3)

    # Small shapes consistent with the module: B meshes, V vertices, F faces.
    B, V, NF = 2, 32, 20
    coord_out = jax.random.normal(k1, (B, V, 3), dtype=jnp.float32)
    coord_gt = jax.random.normal(k2, (B, V, 3), dtype=jnp.float32)
    valid = jax.random.bernoulli(k3, 0.8, (B, V, 1)).astype(jnp.float32)

    # Deterministic triangle faces with three distinct corners each.
    f_idx = np.arange(NF)
    face = np.stack([f_idx % V, (f_idx + 7) % V, (f_idx + 13) % V],
                    axis=1).astype(np.int32)

    out = jax.block_until_ready(normal_vector_loss(coord_out, coord_gt, valid, face))
    assert out.shape == (B, 3 * NF, 1), out.shape

    ref = jax.block_until_ready(
        _reference(coord_out, coord_gt, valid, jnp.asarray(face)))
    np.testing.assert_allclose(np.asarray(out), np.asarray(ref),
                               atol=1e-5, rtol=1e-4)

    print("KERNEL_OK")
</pallas_src>

<mosaic_0001>
module attributes {stable_mosaic.version = 11 : i64} {
  func.func @_nvl_kernel(%arg0: i32, %arg1: i32, %arg2: memref<1x3x3x8x128xf32, #tpu.memory_space<vmem>>, %arg3: memref<1x3x3x8x128xf32, #tpu.memory_space<vmem>>, %arg4: memref<1x8x128xf32, #tpu.memory_space<vmem>>, %arg5: memref<1x3x8x128xf32, #tpu.memory_space<vmem>>) attributes {dimension_semantics = [#tpu.dimension_semantics<parallel>, #tpu.dimension_semantics<parallel>], iteration_bounds = array<i64: 2, 1>, scalar_prefetch = 0 : i64, scratch_operands = 0 : i64, tpu.core_type = #tpu.core_type<tc>, window_params = [{transform_indices = @transform_0, window_bounds = array<i64: 1, 3, 3, 8, 128>}, {transform_indices = @transform_1, window_bounds = array<i64: 1, 3, 3, 8, 128>}, {transform_indices = @transform_2, window_bounds = array<i64: 1, 8, 128>}, {transform_indices = @transform_3, window_bounds = array<i64: 1, 3, 8, 128>}]} {
    %c0 = arith.constant 0 : index
    %c0_0 = arith.constant 0 : index
    %c0_1 = arith.constant 0 : index
    %c0_2 = arith.constant 0 : index
    %c0_3 = arith.constant 0 : index
    %0 = vector.load %arg2[%c0, %c0_0, %c0_1, %c0_2, %c0_3] : memref<1x3x3x8x128xf32, #tpu.memory_space<vmem>>, vector<1x1x1x8x128xf32>
    %1 = vector.shape_cast %0 : vector<1x1x1x8x128xf32> to vector<8x128xf32>
    %c0_4 = arith.constant 0 : index
    %c0_5 = arith.constant 0 : index
    %c1 = arith.constant 1 : index
    %c0_6 = arith.constant 0 : index
    %c0_7 = arith.constant 0 : index
    %2 = vector.load %arg2[%c0_4, %c0_5, %c1, %c0_6, %c0_7] : memref<1x3x3x8x128xf32, #tpu.memory_space<vmem>>, vector<1x1x1x8x128xf32>
    %3 = vector.shape_cast %2 : vector<1x1x1x8x128xf32> to vector<8x128xf32>
    %c0_8 = arith.constant 0 : index
    %c0_9 = arith.constant 0 : index
    %c2 = arith.constant 2 : index
    %c0_10 = arith.constant 0 : index
    %c0_11 = arith.constant 0 : index
    %4 = vector.load %arg2[%c0_8, %c0_9, %c2, %c0_10, %c0_11] : memref<1x3x3x8x128xf32, #tpu.memory_space<vmem>>, vector<1x1x1x8x128xf32>
    %5 = vector.shape_cast %4 : vector<1x1x1x8x128xf32> to vector<8x128xf32>
    %c0_12 = arith.constant 0 : index
    %c1_13 = arith.constant 1 : index
    %c0_14 = arith.constant 0 : index
    %c0_15 = arith.constant 0 : index
    %c0_16 = arith.constant 0 : index
    %6 = vector.load %arg2[%c0_12, %c1_13, %c0_14, %c0_15, %c0_16] : memref<1x3x3x8x128xf32, #tpu.memory_space<vmem>>, vector<1x1x1x8x128xf32>
    %7 = vector.shape_cast %6 : vector<1x1x1x8x128xf32> to vector<8x128xf32>
    %c0_17 = arith.constant 0 : index
    %c1_18 = arith.constant 1 : index
    %c1_19 = arith.constant 1 : index
    %c0_20 = arith.constant 0 : index
    %c0_21 = arith.constant 0 : index
    %8 = vector.load %arg2[%c0_17, %c1_18, %c1_19, %c0_20, %c0_21] : memref<1x3x3x8x128xf32, #tpu.memory_space<vmem>>, vector<1x1x1x8x128xf32>
    %9 = vector.shape_cast %8 : vector<1x1x1x8x128xf32> to vector<8x128xf32>
    %c0_22 = arith.constant 0 : index
    %c1_23 = arith.constant 1 : index
    %c2_24 = arith.constant 2 : index
    %c0_25 = arith.constant 0 : index
    %c0_26 = arith.constant 0 : index
    %10 = vector.load %arg2[%c0_22, %c1_23, %c2_24, %c0_25, %c0_26] : memref<1x3x3x8x128xf32, #tpu.memory_space<vmem>>, vector<1x1x1x8x128xf32>
    %11 = vector.shape_cast %10 : vector<1x1x1x8x128xf32> to vector<8x128xf32>
    %c0_27 = arith.constant 0 : index
    %c2_28 = arith.constant 2 : index
    %c0_29 = arith.constant 0 : index
    %c0_30 = arith.constant 0 : index
    %c0_31 = arith.constant 0 : index
    %12 = vector.load %arg2[%c0_27, %c2_28, %c0_29, %c0_30, %c0_31] : memref<1x3x3x8x128xf32, #tpu.memory_space<vmem>>, vector<1x1x1x8x128xf32>
    %13 = vector.shape_cast %12 : vector<1x1x1x8x128xf32> to vector<8x128xf32>
    %c0_32 = arith.constant 0 : index
    %c2_33 = arith.constant 2 : index
    %c1_34 = arith.constant 1 : index
    %c0_35 = arith.constant 0 : index
    %c0_36 = arith.constant 0 : index
    %14 = vector.load %arg2[%c0_32, %c2_33, %c1_34, %c0_35, %c0_36] : memref<1x3x3x8x128xf32, #tpu.memory_space<vmem>>, vector<1x1x1x8x128xf32>
    %15 = vector.shape_cast %14 : vector<1x1x1x8x128xf32> to vector<8x128xf32>
    %c0_37 = arith.constant 0 : index
    %c2_38 = arith.constant 2 : index
    %c2_39 = arith.constant 2 : index
    %c0_40 = arith.constant 0 : index
    %c0_41 = arith.constant 0 : index
    %16 = vector.load %arg2[%c0_37, %c2_38, %c2_39, %c0_40, %c0_41] : memref<1x3x3x8x128xf32, #tpu.memory_space<vmem>>, vector<1x1x1x8x128xf32>
    %17 = vector.shape_cast %16 : vector<1x1x1x8x128xf32> to vector<8x128xf32>
    %c0_42 = arith.constant 0 : index
    %c0_43 = arith.constant 0 : index
    %c0_44 = arith.constant 0 : index
    %c0_45 = arith.constant 0 : index
    %c0_46 = arith.constant 0 : index
    %18 = vector.load %arg3[%c0_42, %c0_43, %c0_44, %c0_45, %c0_46] : memref<1x3x3x8x128xf32, #tpu.memory_space<vmem>>, vector<1x1x1x8x128xf32>
    %19 = vector.shape_cast %18 : vector<1x1x1x8x128xf32> to vector<8x128xf32>
    %c0_47 = arith.constant 0 : index
    %c0_48 = arith.constant 0 : index
    %c1_49 = arith.constant 1 : index
    %c0_50 = arith.constant 0 : index
    %c0_51 = arith.constant 0 : index
    %20 = vector.load %arg3[%c0_47, %c0_48, %c1_49, %c0_50, %c0_51] : memref<1x3x3x8x128xf32, #tpu.memory_space<vmem>>, vector<1x1x1x8x128xf32>
    %21 = vector.shape_cast %20 : vector<1x1x1x8x128xf32> to vector<8x128xf32>
    %c0_52 = arith.constant 0 : index
    %c0_53 = arith.constant 0 : index
    %c2_54 = arith.constant 2 : index
    %c0_55 = arith.constant 0 : index
    %c0_56 = arith.constant 0 : index
    %22 = vector.load %arg3[%c0_52, %c0_53, %c2_54, %c0_55, %c0_56] : memref<1x3x3x8x128xf32, #tpu.memory_space<vmem>>, vector<1x1x1x8x128xf32>
    %23 = vector.shape_cast %22 : vector<1x1x1x8x128xf32> to vector<8x128xf32>
    %c0_57 = arith.constant 0 : index
    %c1_58 = arith.constant 1 : index
    %c0_59 = arith.constant 0 : index
    %c0_60 = arith.constant 0 : index
    %c0_61 = arith.constant 0 : index
    %24 = vector.load %arg3[%c0_57, %c1_58, %c0_59, %c0_60, %c0_61] : memref<1x3x3x8x128xf32, #tpu.memory_space<vmem>>, vector<1x1x1x8x128xf32>
    %25 = vector.shape_cast %24 : vector<1x1x1x8x128xf32> to vector<8x128xf32>
    %c0_62 = arith.constant 0 : index
    %c1_63 = arith.constant 1 : index
    %c1_64 = arith.constant 1 : index
    %c0_65 = arith.constant 0 : index
    %c0_66 = arith.constant 0 : index
    %26 = vector.load %arg3[%c0_62, %c1_63, %c1_64, %c0_65, %c0_66] : memref<1x3x3x8x128xf32, #tpu.memory_space<vmem>>, vector<1x1x1x8x128xf32>
    %27 = vector.shape_cast %26 : vector<1x1x1x8x128xf32> to vector<8x128xf32>
    %c0_67 = arith.constant 0 : index
    %c1_68 = arith.constant 1 : index
    %c2_69 = arith.constant 2 : index
    %c0_70 = arith.constant 0 : index
    %c0_71 = arith.constant 0 : index
    %28 = vector.load %arg3[%c0_67, %c1_68, %c2_69, %c0_70, %c0_71] : memref<1x3x3x8x128xf32, #tpu.memory_space<vmem>>, vector<1x1x1x8x128xf32>
    %29 = vector.shape_cast %28 : vector<1x1x1x8x128xf32> to vector<8x128xf32>
    %c0_72 = arith.constant 0 : index
    %c2_73 = arith.constant 2 : index
    %c0_74 = arith.constant 0 : index
    %c0_75 = arith.constant 0 : index
    %c0_76 = arith.constant 0 : index
    %30 = vector.load %arg3[%c0_72, %c2_73, %c0_74, %c0_75, %c0_76] : memref<1x3x3x8x128xf32, #tpu.memory_space<vmem>>, vector<1x1x1x8x128xf32>
    %31 = vector.shape_cast %30 : vector<1x1x1x8x128xf32> to vector<8x128xf32>
    %c0_77 = arith.constant 0 : index
    %c2_78 = arith.constant 2 : index
    %c1_79 = arith.constant 1 : index
    %c0_80 = arith.constant 0 : index
    %c0_81 = arith.constant 0 : index
    %32 = vector.load %arg3[%c0_77, %c2_78, %c1_79, %c0_80, %c0_81] : memref<1x3x3x8x128xf32, #tpu.memory_space<vmem>>, vector<1x1x1x8x128xf32>
    %33 = vector.shape_cast %32 : vector<1x1x1x8x128xf32> to vector<8x128xf32>
    %c0_82 = arith.constant 0 : index
    %c2_83 = arith.constant 2 : index
    %c2_84 = arith.constant 2 : index
    %c0_85 = arith.constant 0 : index
    %c0_86 = arith.constant 0 : index
    %34 = vector.load %arg3[%c0_82, %c2_83, %c2_84, %c0_85, %c0_86] : memref<1x3x3x8x128xf32, #tpu.memory_space<vmem>>, vector<1x1x1x8x128xf32>
    %35 = vector.shape_cast %34 : vector<1x1x1x8x128xf32> to vector<8x128xf32>
    %36 = arith.subf %7, %1 : vector<8x128xf32>
    %37 = arith.subf %9, %3 : vector<8x128xf32>
    %38 = arith.subf %11, %5 : vector<8x128xf32>
    %39 = arith.mulf %36, %36 : vector<8x128xf32>
    %40 = arith.mulf %37, %37 : vector<8x128xf32>
    %41 = arith.addf %39, %40 : vector<8x128xf32>
    %42 = arith.mulf %38, %38 : vector<8x128xf32>
    %43 = arith.addf %41, %42 : vector<8x128xf32>
    %cst = arith.constant 1.000000e-24 : f32
    %44 = vector.broadcast %cst : f32 to vector<8x128xf32>
    %45 = arith.maximumf %43, %44 : vector<8x128xf32>
    %46 = math.rsqrt %45 : vector<8x128xf32>
    %47 = arith.mulf %36, %46 : vector<8x128xf32>
    %48 = arith.mulf %37, %46 : vector<8x128xf32>
    %49 = arith.mulf %38, %46 : vector<8x128xf32>
    %50 = arith.subf %13, %1 : vector<8x128xf32>
    %51 = arith.subf %15, %3 : vector<8x128xf32>
    %52 = arith.subf %17, %5 : vector<8x128xf32>
    %53 = arith.mulf %50, %50 : vector<8x128xf32>
    %54 = arith.mulf %51, %51 : vector<8x128xf32>
    %55 = arith.addf %53, %54 : vector<8x128xf32>
    %56 = arith.mulf %52, %52 : vector<8x128xf32>
    %57 = arith.addf %55, %56 : vector<8x128xf32>
    %cst_87 = arith.constant 1.000000e-24 : f32
    %58 = vector.broadcast %cst_87 : f32 to vector<8x128xf32>
    %59 = arith.maximumf %57, %58 : vector<8x128xf32>
    %60 = math.rsqrt %59 : vector<8x128xf32>
    %61 = arith.mulf %50, %60 : vector<8x128xf32>
    %62 = arith.mulf %51, %60 : vector<8x128xf32>
    %63 = arith.mulf %52, %60 : vector<8x128xf32>
    %64 = arith.subf %13, %7 : vector<8x128xf32>
    %65 = arith.subf %15, %9 : vector<8x128xf32>
    %66 = arith.subf %17, %11 : vector<8x128xf32>
    %67 = arith.mulf %64, %64 : vector<8x128xf32>
    %68 = arith.mulf %65, %65 : vector<8x128xf32>
    %69 = arith.addf %67, %68 : vector<8x128xf32>
    %70 = arith.mulf %66, %66 : vector<8x128xf32>
    %71 = arith.addf %69, %70 : vector<8x128xf32>
    %cst_88 = arith.constant 1.000000e-24 : f32
    %72 = vector.broadcast %cst_88 : f32 to vector<8x128xf32>
    %73 = arith.maximumf %71, %72 : vector<8x128xf32>
    %74 = math.rsqrt %73 : vector<8x128xf32>
    %75 = arith.mulf %64, %74 : vector<8x128xf32>
    %76 = arith.mulf %65, %74 : vector<8x128xf32>
    %77 = arith.mulf %66, %74 : vector<8x128xf32>
    %78 = arith.subf %25, %19 : vector<8x128xf32>
    %79 = arith.subf %27, %21 : vector<8x128xf32>
    %80 = arith.subf %29, %23 : vector<8x128xf32>
    %81 = arith.mulf %78, %78 : vector<8x128xf32>
    %82 = arith.mulf %79, %79 : vector<8x128xf32>
    %83 = arith.addf %81, %82 : vector<8x128xf32>
    %84 = arith.mulf %80, %80 : vector<8x128xf32>
    %85 = arith.addf %83, %84 : vector<8x128xf32>
    %cst_89 = arith.constant 1.000000e-24 : f32
    %86 = vector.broadcast %cst_89 : f32 to vector<8x128xf32>
    %87 = arith.maximumf %85, %86 : vector<8x128xf32>
    %88 = math.rsqrt %87 : vector<8x128xf32>
    %89 = arith.mulf %78, %88 : vector<8x128xf32>
    %90 = arith.mulf %79, %88 : vector<8x128xf32>
    %91 = arith.mulf %80, %88 : vector<8x128xf32>
    %92 = arith.subf %31, %19 : vector<8x128xf32>
    %93 = arith.subf %33, %21 : vector<8x128xf32>
    %94 = arith.subf %35, %23 : vector<8x128xf32>
    %95 = arith.mulf %92, %92 : vector<8x128xf32>
    %96 = arith.mulf %93, %93 : vector<8x128xf32>
    %97 = arith.addf %95, %96 : vector<8x128xf32>
    %98 = arith.mulf %94, %94 : vector<8x128xf32>
    %99 = arith.addf %97, %98 : vector<8x128xf32>
    %cst_90 = arith.constant 1.000000e-24 : f32
    %100 = vector.broadcast %cst_90 : f32 to vector<8x128xf32>
    %101 = arith.maximumf %99, %100 : vector<8x128xf32>
    %102 = math.rsqrt %101 : vector<8x128xf32>
    %103 = arith.mulf %92, %102 : vector<8x128xf32>
    %104 = arith.mulf %93, %102 : vector<8x128xf32>
    %105 = arith.mulf %94, %102 : vector<8x128xf32>
    %106 = arith.mulf %90, %105 : vector<8x128xf32>
    %107 = arith.mulf %91, %104 : vector<8x128xf32>
    %108 = arith.subf %106, %107 : vector<8x128xf32>
    %109 = arith.mulf %91, %103 : vector<8x128xf32>
    %110 = arith.mulf %89, %105 : vector<8x128xf32>
    %111 = arith.subf %109, %110 : vector<8x128xf32>
    %112 = arith.mulf %89, %104 : vector<8x128xf32>
    %113 = arith.mulf %90, %103 : vector<8x128xf32>
    %114 = arith.subf %112, %113 : vector<8x128xf32>
    %115 = arith.mulf %108, %108 : vector<8x128xf32>
    %116 = arith.mulf %111, %111 : vector<8x128xf32>
    %117 = arith.addf %115, %116 : vector<8x128xf32>
    %118 = arith.mulf %114, %114 : vector<8x128xf32>
    %119 = arith.addf %117, %118 : vector<8x128xf32>
    %cst_91 = arith.constant 1.000000e-24 : f32
    %120 = vector.broadcast %cst_91 : f32 to vector<8x128xf32>
    %121 = arith.maximumf %119, %120 : vector<8x128xf32>
    %122 = math.rsqrt %121 : vector<8x128xf32>
    %123 = arith.mulf %108, %122 : vector<8x128xf32>
    %124 = arith.mulf %111, %122 : vector<8x128xf32>
    %125 = arith.mulf %114, %122 : vector<8x128xf32>
    %c0_92 = arith.constant 0 : index
    %c0_93 = arith.constant 0 : index
    %c0_94 = arith.constant 0 : index
    %126 = vector.load %arg4[%c0_92, %c0_93, %c0_94] : memref<1x8x128xf32, #tpu.memory_space<vmem>>, vector<1x8x128xf32>
    %127 = vector.shape_cast %126 : vector<1x8x128xf32> to vector<8x128xf32>
    %128 = arith.mulf %47, %123 : vector<8x128xf32>
    %129 = arith.mulf %48, %124 : vector<8x128xf32>
    %130 = arith.addf %128, %129 : vector<8x128xf32>
    %131 = arith.mulf %49, %125 : vector<8x128xf32>
    %132 = arith.addf %130, %131 : vector<8x128xf32>
    %133 = math.absf %132 : vector<8x128xf32>
    %134 = arith.mulf %133, %127 : vector<8x128xf32>
    %c0_95 = arith.constant 0 : index
    %c0_96 = arith.constant 0 : index
    %c0_97 = arith.constant 0 : index
    %c0_98 = arith.constant 0 : index
    %135 = vector.load %arg5[%c0_95, %c0_96, %c0_97, %c0_98] : memref<1x3x8x128xf32, #tpu.memory_space<vmem>>, vector<1x1x8x128xf32>
    %136 = vector.shape_cast %135 : vector<1x1x8x128xf32> to vector<8x128xf32>
    %137 = vector.shape_cast %134 : vector<8x128xf32> to vector<1x1x8x128xf32>
    tpu.vector_store %arg5[%c0_95, %c0_96, %c0_97, %c0_98], %137 {strides = array<i32>} : memref<1x3x8x128xf32, #tpu.memory_space<vmem>>, vector<1x1x8x128xf32>,
    %138 = arith.mulf %61, %123 : vector<8x128xf32>
    %139 = arith.mulf %62, %124 : vector<8x128xf32>
    %140 = arith.addf %138, %139 : vector<8x128xf32>
    %141 = arith.mulf %63, %125 : vector<8x128xf32>
    %142 = arith.addf %140, %141 : vector<8x128xf32>
    %143 = math.absf %142 : vector<8x128xf32>
    %144 = arith.mulf %143, %127 : vector<8x128xf32>
    %c0_99 = arith.constant 0 : index
    %c1_100 = arith.constant 1 : index
    %c0_101 = arith.constant 0 : index
    %c0_102 = arith.constant 0 : index
    %145 = vector.load %arg5[%c0_99, %c1_100, %c0_101, %c0_102] : memref<1x3x8x128xf32, #tpu.memory_space<vmem>>, vector<1x1x8x128xf32>
    %146 = vector.shape_cast %145 : vector<1x1x8x128xf32> to vector<8x128xf32>
    %147 = vector.shape_cast %144 : vector<8x128xf32> to vector<1x1x8x128xf32>
    tpu.vector_store %arg5[%c0_99, %c1_100, %c0_101, %c0_102], %147 {strides = array<i32>} : memref<1x3x8x128xf32, #tpu.memory_space<vmem>>, vector<1x1x8x128xf32>,
    %148 = arith.mulf %75, %123 : vector<8x128xf32>
    %149 = arith.mulf %76, %124 : vector<8x128xf32>
    %150 = arith.addf %148, %149 : vector<8x128xf32>
    %151 = arith.mulf %77, %125 : vector<8x128xf32>
    %152 = arith.addf %150, %151 : vector<8x128xf32>
    %153 = math.absf %152 : vector<8x128xf32>
    %154 = arith.mulf %153, %127 : vector<8x128xf32>
    %c0_103 = arith.constant 0 : index
    %c2_104 = arith.constant 2 : index
    %c0_105 = arith.constant 0 : index
    %c0_106 = arith.constant 0 : index
    %155 = vector.load %arg5[%c0_103, %c2_104, %c0_105, %c0_106] : memref<1x3x8x128xf32, #tpu.memory_space<vmem>>, vector<1x1x8x128xf32>
    %156 = vector.shape_cast %155 : vector<1x1x8x128xf32> to vector<8x128xf32>
    %157 = vector.shape_cast %154 : vector<8x128xf32> to vector<1x1x8x128xf32>
    tpu.vector_store %arg5[%c0_103, %c2_104, %c0_105, %c0_106], %157 {strides = array<i32>} : memref<1x3x8x128xf32, #tpu.memory_space<vmem>>, vector<1x1x8x128xf32>,
    return
  }
  func.func @transform_0(%arg0: i32, %arg1: i32) -> (i32, i32, i32, i32, i32) {
    %c0_i32 = arith.constant 0 : i32
    %c0_i32_0 = arith.constant 0 : i32
    %c0_i32_1 = arith.constant 0 : i32
    %c0_i32_2 = arith.constant 0 : i32
    return %arg0, %c0_i32, %c0_i32_0, %arg1, %c0_i32_1 : i32, i32, i32, i32, i32
  }
  func.func @transform_1(%arg0: i32, %arg1: i32) -> (i32, i32, i32, i32, i32) {
    %c0_i32 = arith.constant 0 : i32
    %c0_i32_0 = arith.constant 0 : i32
    %c0_i32_1 = arith.constant 0 : i32
    %c0_i32_2 = arith.constant 0 : i32
    return %arg0, %c0_i32, %c0_i32_0, %arg1, %c0_i32_1 : i32, i32, i32, i32, i32
  }
  func.func @transform_2(%arg0: i32, %arg1: i32) -> (i32, i32, i32) {
    %c0_i32 = arith.constant 0 : i32
    %c0_i32_0 = arith.constant 0 : i32
    return %arg0, %arg1, %c0_i32 : i32, i32, i32
  }
  func.func @transform_3(%arg0: i32, %arg1: i32) -> (i32, i32, i32, i32) {
    %c0_i32 = arith.constant 0 : i32
    %c0_i32_0 = arith.constant 0 : i32
    %c0_i32_1 = arith.constant 0 : i32
    return %arg0, %c0_i32, %arg1, %c0_i32_0 : i32, i32, i32, i32
  }
}

</mosaic_0001>

<bundles_post_ra>
// kernel: tpu_custom_call.1
= control target key start
LH: loop header
LB: loop body
LE: loop exit
PB: predicated region body
PF: predicated region fallthrough
CT: control target
= control target key end

     0   :  { %s1185_s0 = inlined_call_operand.hbm [shape: f32[2,3,3,8,128], index: 0, kind: input, shape index: {}]   ;;  %s1186_s1 = inlined_call_operand.hbm [shape: f32[2,3,3,8,128], index: 1, kind: input, shape index: {}]   ;;  %s1187_s2 = inlined_call_operand.hbm [shape: f32[2,8,128], index: 2, kind: input, shape index: {}]   ;;  %s1188_s3 = inlined_call_operand.hbm [shape: f32[2,3,8,128], index: 3, kind: output, shape index: {}]  }
   0x1   :  { %1199 = sst [smem:[#allocation17_spill]] %s1185_s0 }
   0x2   :  { %1200 = sst [smem:[#allocation18_spill]] %s1186_s1 }
   0x3   :  { %8 = vsyncpa [#allocation3], 0 }
   0x4   :  { %10 = vsyncpa [#allocation3 + $0x1], 0 }
   0x5   :  { %11 = vsyncpa [#allocation6], 0 }
   0x6   :  { %13 = vsyncpa [#allocation6 + $0x1], 0 }
   0x7   :  { %14 = vsyncpa [#allocation4], 0 }
   0x8   :  { %16 = vsyncpa [#allocation4 + $0x1], 0  ;;  %s909_s12 = smov 0   ;;  %s911_s13 = smov 0  }
   0x9   :  { %s913_s14 = smov 0   ;;  %s915_s15 = smov 0  }
   0xa   :  { %s917_s16 = smov 0   ;;  %s919_s17 = smov 0  }
   0xb LB: > { %1201 = sst [smem:[#allocation12_spill]] %s867_s14  ;;  %s940_s18 = sadd.s32 4294967295, %s879_s17   ;;  %s879_s17 = sphi %s919_s17, %s22_s17   ;;  %s875_s16 = sphi %s917_s16, %s1233_s16   ;;  %s871_s15 = sphi %s915_s15, %s1232_s15   ;;  %s867_s14 = sphi %s913_s14, %s1228_s14   ;;  %s863_s13 = sphi %s911_s13, %s1231_s13   ;;  %s859_s12 = sphi %s909_s12, %s1230_s12  }
   0xc   : > { %1202 = sst [smem:[#allocation13_spill]] %s879_s17  ;;  %s578_s19 = sadd.s32 4294967294, %s879_s17  }
   0xd   : > { %s34_s20 = sadd.s32 1, %s875_s16  ;;  %s43_s21 = sadd.s32 1, %s867_s14 }
   0xe   : > { %p36_p0 = scmp.ge.s32.totalorder %s34_s20, 2  ;;  %p50_p1 = scmp.ne.s32.totalorder %s867_s14, %s863_s13 }
   0xf   : > { %p51_p2 = scmp.eq.s32.totalorder %s879_s17, 0  ;;  %p56_p3 = scmp.ne.s32.totalorder %s863_s13, %s859_s12 }
  0x10   : > { %s1235_s20 = smov (%p36_p0, %s34_s20), 0  ;;  %p57_p5 = scmp.eq.s32.totalorder %s940_s18, 0 }
  0x11   : > { %1203 = sst [smem:[#allocation14_spill]] %s1235_s20  ;;  %p952_p4 = por %p51_p2, %p50_p1 }
  0x12   : > { %s38_s23 = ssub.s32 %s875_s16, %s1235_s20  ;;  %p138_p6 = scmp.eq.s32.totalorder %s940_s18, 1 }
  0x13   : > { %p41_p7 = scmp.eq.s32.totalorder %s38_s23, 0  ;;  %p960_p8 = por %p57_p5, %p56_p3 }
  0x14   : > { %p964_p9 = por %p138_p6, %p50_p1  ;;  %p144_p10 = scmp.eq.s32.totalorder %s578_s19, 1 }
  0x15   : > { %s1205_s24 = scalar_select %p960_p8, 1, 0 }
  0x16   : > { %s1206_s25 = scalar_select %p964_p9, 1, 0 }
  0x17   : > { %s969_s26 = scalar_select %p41_p7, %s867_s14, %s43_s21  }
  0x18   : > { %p971_p11 = por %p144_p10, %p56_p3  ;;  %p637_p13 = scmp.lt.s32.totalorder %s879_s17, 2 }
  0x19   : > { %1207 = sst [smem:[#allocation15_spill]] %s969_s26  ;;  %s978_s28 = sand.u32 1, %s867_s14  }
  0x1a   : > { %s1208_s27 = scalar_select %p971_p11, 1, 0 }
  0x1b   : > { %s608_s29 = smul.u32 72, %s978_s28  ;;  %p984_p0 = pnand %p637_p13, %p952_p4 }
  0x1c   : > { %1209 = sst [smem:[#allocation16_spill]] %s1208_s27  ;;  %s609_s30 = smul.u32 1152, %s875_s16 }
  0x1d   : > { %s1210_s4 = scalar_select %p984_p0, 1, 0 }
  0x1e   : > { %s186_s5 = sand.u32 1, %s879_s17   ;;  %s1211_s1 = sld [smem:[#allocation18_spill]] }
  0x1f   : > { %s190_s9 = scalar_lea.vmem [#allocation5], %s608_s29  ;;  %s1002_s11 = scalar_lea.sflag [#allocation6], %s186_s5 }
  0x20   : > { %s198_s10 = sshll.u32 %s190_s9, 4  ;;  %p1008_p4 = pneg %p984_p0  ;;  %s999_s10 = int_to_ptr.vmem [resolvable:$true] %s198_s10 }
  0x24   : > { %s994_s8 = scalar_lea.hbm %s1211_s1, %s609_s30  ;;  %s708_s6 = scalar_lea.hbm %s1211_s1, 2304 }
  0x25   : > { %s703_s19 = scalar_lea.hbm %s994_s8, 1152  ;;  %p709_p7 = scmp.lt.u32.totalorder %s994_s8, %s1211_s1 }
  0x26   : > { %p704_p3 = scmp.ne.s32.totalorder %s994_s8, %s703_s19  ;;  %p710_p10 = scmp.lt.u32.totalorder %s708_s6, %s703_s19 }
  0x27   : > { %p712_p12 = scmp.lt.u32.totalorder %s703_s19, %s994_s8 }
  0x28   : > { %p706_p5 = pnand %p1008_p4, %p704_p3  ;;  %p711_p13 = por %p710_p10, %p709_p7 }
  0x2a   : > { %p707_p6 = pneg %p706_p5  ;;  %p713_p1 = por %p712_p12, %p711_p13 }
  0x2c   : > { %p714_p2 = pnand %p713_p1, %p707_p6 }
  0x2e   : > { %717 = shalt.err (!%p714_p2)
}
  0x2f   : > { %s718_s5 = scalar_lea.vmem %s999_s10, 1152  ;;  %s881_s22 = smov [#allocation5]  }
  0x30   : > { %p719_p3 = scmp.ne.s32.totalorder %s999_s10, %s718_s5  ;;  %s723_s23 = sshll.u32 %s881_s22, 4  ;;  %s724_s23 = int_to_ptr.vmem [resolvable:$false] %s723_s23 }
  0x31   : > { %s725_s7 = scalar_lea.vmem %s724_s23, 2304  ;;  %p726_p9 = scmp.lt.s32.totalorder %s999_s10, %s724_s23 }
  0x32   : > { %p721_p5 = pnand %p719_p3, %p1008_p4  ;;  %p727_p8 = scmp.lt.s32.totalorder %s725_s7, %s718_s5 }
  0x34   : > { %p722_p11 = pneg %p721_p5  ;;  %p728_p7 = por %p727_p8, %p726_p9 }
  0x36   : > { %p729_p10 = pnand %p728_p7, %p722_p11 }
  0x38   : > { %732 = shalt.err (!%p729_p10)
}
  0x39   : > { %s1191_s19 = smov 128   ;;  %s1192_s6 = smov 8  }
  0x3a   : > { %629 = dma.hbm_to_vmem [thread:$0]  (!%p984_p0), %s994_s8, 1152, %s999_s10, %s1002_s11, %s1191_s19, %s1191_s19, %s1192_s6  }
  0x3b   : > { %p1213_p8 = scmp.lt.s32.totalorder %s879_s17, 3  ;;  %p1214_p9 = scmp.ge.s32.totalorder %s879_s17, 1 }
  0x3c   : > { %s1216_s0 = sld [smem:[#allocation17_spill]]  ;;  %s168_s7 = scalar_lea.vmem [#allocation2], %s608_s29 }
  0x3d   : > { %p1039_p11 = pnand %p1214_p9, %p1213_p8  ;;  %s176_s1 = sshll.u32 %s168_s7, 4  ;;  %s1053_s1 = int_to_ptr.vmem [resolvable:$true] %s176_s1 }
  0x3e   : > { %s583_s8 = sshll.u32 %s978_s28, 3  ;;  %s165_s10 = scalar_lea.sflag [#allocation3], %s978_s28 }
  0x3f   : > { %s1215_s9 = scalar_select %p1039_p11, 1, 0 }
  0x42   : > { %s1048_s23 = scalar_lea.hbm %s1216_s0, %s609_s30  ;;  %s738_s30 = scalar_lea.hbm %s1216_s0, 2304 }
  0x43   : > { %s733_s19 = scalar_lea.hbm %s1048_s23, 1152  ;;  %p739_p6 = scmp.lt.u32.totalorder %s1048_s23, %s1216_s0 }
  0x44   : > { %p734_p12 = scmp.ne.s32.totalorder %s1048_s23, %s733_s19  ;;  %p740_p13 = scmp.lt.u32.totalorder %s738_s30, %s733_s19 }
  0x45   : > { %p742_p5 = scmp.lt.u32.totalorder %s733_s19, %s1048_s23 }
  0x46   : > { %p736_p1 = pnand %p734_p12, %p1008_p4  ;;  %p741_p3 = por %p740_p13, %p739_p6 }
  0x48   : > { %p737_p2 = pneg %p736_p1  ;;  %p743_p7 = por %p742_p5, %p741_p3 }
  0x4a   : > { %p744_p10 = pnand %p743_p7, %p737_p2 }
  0x4c   : > { %747 = shalt.err (!%p744_p10)
}
  0x4d   : > { %s748_s29 = scalar_lea.vmem %s1053_s1, 1152  ;;  %s884_s6 = smov [#allocation2]  }
  0x4e   : > { %p749_p8 = scmp.ne.s32.totalorder %s1053_s1, %s748_s29  ;;  %s753_s7 = sshll.u32 %s884_s6, 4  ;;  %s754_s7 = int_to_ptr.vmem [resolvable:$false] %s753_s7 }
  0x4f   : > { %s755_s20 = scalar_lea.vmem %s754_s7, 2304  ;;  %p756_p1 = scmp.lt.s32.totalorder %s1053_s1, %s754_s7 }
  0x50   : > { %p751_p9 = pnand %p749_p8, %p1008_p4  ;;  %p757_p11 = scmp.lt.s32.totalorder %s755_s20, %s748_s29 }
  0x52   : > { %p752_p12 = pneg %p751_p9  ;;  %p758_p6 = por %p757_p11, %p756_p1 }
  0x54   : > { %p759_p13 = pnand %p758_p6, %p752_p12 }
  0x56   : > { %762 = shalt.err (!%p759_p13)
}
  0x57   : > { %s1217_s19 = smov 8   ;;  %s1218_s5 = smov 128  }
  0x58   : > { %626 = dma.hbm_to_vmem [thread:$0]  (!%p984_p0), %s1048_s23, 1152, %s1053_s1, %s165_s10, %s1218_s5, %s1218_s5, %s1217_s19  }
  0x59   : > { %s584_s30 = sshll.u32 %s875_s16, 7  ;;  %s212_s22 = scalar_lea.vmem [#allocation7], %s583_s8 }
  0x5a   : > { %s220_s29 = sshll.u32 %s212_s22, 4  ;;  %s218_s20 = scalar_lea.hbm %s1187_s2, %s584_s30  ;;  %s221_s29 = int_to_ptr.vmem [resolvable:$true] %s220_s29 }
  0x5b   : > { %s763_s0 = scalar_lea.hbm %s218_s20, 128  ;;  %s768_s17 = scalar_lea.hbm %s1187_s2, 256 }
  0x5c   : > { %p764_p11 = scmp.ne.s32.totalorder %s218_s20, %s763_s0  ;;  %p769_p5 = scmp.lt.u32.totalorder %s218_s20, %s1187_s2 }
  0x5d   : > { %p770_p7 = scmp.lt.u32.totalorder %s768_s17, %s763_s0  ;;  %p772_p8 = scmp.lt.u32.totalorder %s763_s0, %s218_s20 }
  0x5e   : > { %p766_p2 = pnand %p764_p11, %p1008_p4 }
  0x5f   : > { %p771_p10 = por %p770_p7, %p769_p5 }
  0x60   : > { %p767_p3 = pneg %p766_p2 }
  0x61   : > { %p773_p9 = por %p772_p8, %p771_p10 }
  0x63   : > { %p774_p12 = pnand %p773_p9, %p767_p3 }
  0x65   : > { %777 = shalt.err (!%p774_p12)
}
  0x66   : > { %s778_s28 = scalar_lea.vmem %s221_s29, 128  ;;  %s885_s23 = smov [#allocation7]  }
  0x67   : > { %p779_p1 = scmp.ne.s32.totalorder %s221_s29, %s778_s28  ;;  %s783_s8 = sshll.u32 %s885_s23, 4  ;;  %s784_s8 = int_to_ptr.vmem [resolvable:$false] %s783_s8 }
  0x68   : > { %s785_s14 = scalar_lea.vmem %s784_s8, 256  ;;  %p786_p11 = scmp.lt.s32.totalorder %s221_s29, %s784_s8 }
  0x69   : > { %p781_p6 = pnand %p779_p1, %p1008_p4  ;;  %p787_p2 = scmp.lt.s32.totalorder %s785_s14, %s778_s28 }
  0x6b   : > { %p782_p13 = pneg %p781_p6  ;;  %p788_p0 = por %p787_p2, %p786_p11 }
  0x6d   : > { %p789_p5 = pnand %p788_p0, %p782_p13 }
  0x6f   : > { %792 = shalt.err (!%p789_p5)
}
  0x70   : > { %p1219_p7 = scmp.ne.s32.totalorder %s1210_s4, 0  ;;  %p1220_p3 = scmp.ne.s32.totalorder %s1215_s9, 0 }
  0x71   : > { %s1104_s0 = sand.u32 (!%p1220_p3), 1, %s863_s13   ;;  %p1221_p4 = scmp.ne.s32.totalorder (!%p1220_p3), %s1205_s24, 0 }
  0x72   : > { %632 = dma.hbm_to_vmem [thread:$0]  (!%p1219_p7), %s218_s20, 128, %s221_s29, %s1002_s11  }
  0x73   : > { %229 = sbr.rel (%p1220_p3) target bundleno = 203 (0xcb), region = 32  ;;  %s232_s26 = scalar_lea.sflag (!%p1220_p3), [#allocation3], %s1104_s0 }
  0x74   : > { %s612_s17 = smul.u32 (!%p1220_p3), 72, %s1104_s0 }
  0x76   : > { %s1108_s27 = scalar_lea.vmem (!%p1220_p3), [#allocation2], %s612_s17 }
  0x7a   : > { %846 = dma.done.wait (%p1221_p4), %s232_s26, 1152  }
  0x7b   : > { %848 = vsyncadd (%p1221_p4), %s232_s26, 4294966144  ;;  %s240_s4 = sand.u32 1, %s940_s18   ;;  %s244_s21 = scalar_lea.vmem [#allocation5], %s612_s17 }
  0x7c   : > { %s241_s11 = scalar_lea.sflag [#allocation6], %s240_s4 }
  0x7d   : > { %850 = dma.done.wait (%p1221_p4), %s241_s11, 1280  }
  0x7e   : > { %852 = vsyncadd (%p1221_p4), %s241_s11, 4294966016  ;;  %v303_v0 = vld [vmem:[%s244_s21] sm:$0xff]  ;;  %v595_v1 = vld [vmem:[%s244_s21 + $0x8] sm:$0xff]  ;;  %s613_s18 = smul.u32 24, %s1104_s0  ;;  %s586_s24 = sshll.u32 %s1104_s0, 3 }
  0x7f   : > { %v596_v2 = vld [vmem:[%s244_s21 + $0x10] sm:$0xff]  ;;  %v597_v3 = vld [vmem:[%s244_s21 + $0x18] sm:$0xff]  ;;  %v598_v4 = vld [vmem:[%s244_s21 + $0x20] sm:$0xff]  ;;  %s253_s9 = scalar_lea.vmem [#allocation7], %s586_s24  ;;  %s614_s5 = smul.u32 384, %s871_s15 }
  0x80   : > { %v599_v5 = vld [vmem:[%s244_s21 + $0x28] sm:$0xff]  ;;  %v600_v6 = vld [vmem:[%s244_s21 + $0x30] sm:$0xff]  ;;  %v601_v7 = vld [vmem:[%s244_s21 + $0x38] sm:$0xff]  ;;  %v359_v9 = vsub.f32 %v597_v3, %v303_v0  ;;  %v360_v10 = vsub.f32 %v598_v4, %v595_v1  ;;  %s285_s10 = scalar_lea.vmem [#allocation8], %s613_s18  ;;  %s432_s15 = scalar_lea.sflag [#allocation4], %s1104_s0 }
  0x81   : > { %v602_v8 = vld [vmem:[%s244_s21 + $0x40] sm:$0xff]  ;;  %v361_v11 = vsub.f32 %v599_v5, %v596_v2  ;;  %v372_v12 = vsub.f32 %v600_v6, %v303_v0  ;;  %v373_v13 = vsub.f32 %v601_v7, %v595_v1  ;;  %v286_v23 = vld [vmem:[%s1108_s27] sm:$0xff]  ;;  %v587_v26 = vld [vmem:[%s1108_s27 + $0x8] sm:$0xff]  ;;  %s446_s19 = sshll.u32 %s285_s10, 4  ;;  %s1136_s29 = scalar_lea.hbm %s1188_s3, %s614_s5  ;;  %s1131_s19 = int_to_ptr.vmem [resolvable:$true] %s446_s19 }
  0x82   : > { %v362_v14 = vmul.f32 %v359_v9, %v359_v9  ;;  %v374_v15 = vsub.f32 %v602_v8, %v596_v2  ;;  %v363_v16 = vmul.f32 %v360_v10, %v360_v10  ;;  %v589_v27 = vld [vmem:[%s1108_s27 + $0x18] sm:$0xff]  ;;  %v590_v28 = vld [vmem:[%s1108_s27 + $0x20] sm:$0xff]  ;;  %v592_v31 = vld [vmem:[%s1108_s27 + $0x30] sm:$0xff]  ;;  %s793_s6 = scalar_lea.vmem %s1131_s19, 384  ;;  %p1222_p10 = scmp.ne.s32.totalorder %s1206_s25, 0 }
  0x83   : > { %v365_v17 = vmul.f32 %v361_v11, %v361_v11  ;;  %v375_v18 = vmul.f32 %v372_v12, %v372_v12  ;;  %v376_v19 = vmul.f32 %v373_v13, %v373_v13  ;;  %v593_v32 = vld [vmem:[%s1108_s27 + $0x38] sm:$0xff]  ;;  %v320_v33 = vsub.f32 %v589_v27, %v286_v23  ;;  %v588_v34 = vld [vmem:[%s1108_s27 + $0x10] sm:$0xff]  ;;  %v591_v35 = vld [vmem:[%s1108_s27 + $0x28] sm:$0xff]  ;;  %p794_p0 = scmp.ne.s32.totalorder %s1131_s19, %s793_s6  ;;  %s886_s7 = smov [#allocation8]  }
  0x84   : > { %v378_v20 = vmul.f32 %v374_v15, %v374_v15  ;;  %v364_v21 = vadd.f32 %v363_v16, %v362_v14  ;;  %v321_v36 = vsub.f32 %v590_v28, %v587_v26  ;;  %v333_v37 = vsub.f32 %v592_v31, %v286_v23  ;;  %v594_v39 = vld [vmem:[%s1108_s27 + $0x40] sm:$0xff]  ;;  %s797_s20 = sshll.u32 %s886_s7, 4  ;;  %s798_s20 = int_to_ptr.vmem [resolvable:$false] %s797_s20 }
  0x85   : > { %v377_v22 = vadd.f32 %v376_v19, %v375_v18  ;;  %v334_v38 = vsub.f32 %v593_v32, %v587_v26  ;;  %v346_v40 = vsub.f32 %v592_v31, %v589_v27  ;;  %v347_v41 = vsub.f32 %v593_v32, %v590_v28  ;;  %p795_p8 = pnand %p794_p0, %p1222_p10  ;;  %s799_s1 = scalar_lea.vmem %s798_s20, 768 }
  0x86   : > { %v366_v24 = vadd.f32 %v365_v17, %v364_v21  ;;  %v322_v42 = vsub.f32 %v591_v35, %v588_v34  ;;  %v323_v43 = vmul.f32 %v320_v33, %v320_v33  ;;  %v324_v44 = vmul.f32 %v321_v36, %v321_v36  ;;  %p800_p12 = scmp.lt.s32.totalorder %s1131_s19, %s798_s20  ;;  %p801_p1 = scmp.lt.s32.totalorder %s799_s1, %s793_s6 }
  0x87   : > { %v379_v25 = vadd.f32 %v378_v20, %v377_v22  ;;  %v335_v45 = vsub.f32 %v594_v39, %v588_v34  ;;  %v336_v46 = vmul.f32 %v333_v37, %v333_v37  ;;  %v337_v47 = vmul.f32 %v334_v38, %v334_v38  ;;  %p796_p9 = pneg %p795_p8 }
  0x88   : > { %v367_v29 = vmax.f32 %v366_v24, 1e-24  ;;  %v348_v48 = vsub.f32 %v594_v39, %v591_v35  ;;  %v349_v49 = vmul.f32 %v346_v40, %v346_v40  ;;  %v350_v50 = vmul.f32 %v347_v41, %v347_v41  ;;  %p802_p6 = por %p801_p1, %p800_p12 }
  0x89   : > { %v380_v30 = vmax.f32 %v379_v25, 1e-24  ;;  %v325_v51 = vadd.f32 %v324_v44, %v323_v43  ;;  %v326_v52 = vmul.f32 %v322_v42, %v322_v42  ;;  %v338_v53 = vadd.f32 %v337_v47, %v336_v46 }
  0x8a   : > { %691 = vrsqrt.f32 %v367_v29  ;;  %v339_v54 = vmul.f32 %v335_v45, %v335_v45  ;;  %v352_v56 = vmul.f32 %v348_v48, %v348_v48  ;;  %v351_v61 = vadd.f32 %v350_v50, %v349_v49  ;;  %p803_p13 = pnand %p802_p6, %p796_p9 }
  0x8b   : > { %693 = vrsqrt.f32 %v380_v30  ;;  %v327_v1 = vadd.f32 %v326_v52, %v325_v51  ;;  %v404_v52 = vld [vmem:[%s253_s9] sm:$0xff] }
  0x8c   : > { %v340_v2 = vadd.f32 %v339_v54, %v338_v53  ;;  %v353_v14 = vadd.f32 %v352_v56, %v351_v61 }
  0x8d   : > { %v328_v18 = vmax.f32 %v327_v1, 1e-24 }
  0x8f   : > { %695 = vrsqrt.f32 %v328_v18 }
  0x94   : > { %v692_v55 = vpop.eup %691 }
  0x95   : > { %v694_v57 = vpop.eup %693  ;;  %v369_v58 = vmul.f32 %v692_v55, %v359_v9  ;;  %v370_v59 = vmul.f32 %v692_v55, %v360_v10  ;;  %v371_v60 = vmul.f32 %v692_v55, %v361_v11  ;;  %v341_v11 = vmax.f32 %v340_v2, 1e-24 }
  0x96   : > { %v382_v62 = vmul.f32 %v694_v57, %v372_v12  ;;  %v383_v63 = vmul.f32 %v694_v57, %v373_v13  ;;  %v384_v0 = vmul.f32 %v694_v57, %v374_v15  ;;  %v354_v12 = vmax.f32 %v353_v14, 1e-24 }
  0x97   : > { %697 = vrsqrt.f32 %v341_v11 }
  0x98   : > { %v385_v3 = vmul.f32 %v384_v0, %v370_v59  ;;  %v386_v4 = vmul.f32 %v383_v63, %v371_v60  ;;  %v388_v5 = vmul.f32 %v382_v62, %v371_v60  ;;  %v389_v6 = vmul.f32 %v384_v0, %v369_v58 }
  0x99   : > { %v391_v7 = vmul.f32 %v383_v63, %v369_v58  ;;  %v392_v8 = vmul.f32 %v382_v62, %v370_v59  ;;  %699 = vrsqrt.f32 %v354_v12  ;;  %v696_v22 = vpop.eup %695 }
  0x9a   : > { %v387_v16 = vsub.f32 %v385_v3, %v386_v4  ;;  %v390_v17 = vsub.f32 %v388_v5, %v389_v6  ;;  %v330_v25 = vmul.f32 %v696_v22, %v320_v33  ;;  %v331_v26 = vmul.f32 %v696_v22, %v321_v36 }
  0x9b   : > { %v393_v19 = vsub.f32 %v391_v7, %v392_v8  ;;  %v332_v27 = vmul.f32 %v696_v22, %v322_v42 }
  0x9c   : > { %v394_v9 = vmul.f32 %v387_v16, %v387_v16  ;;  %v395_v10 = vmul.f32 %v390_v17, %v390_v17 }
  0x9d   : > { %v397_v20 = vmul.f32 %v393_v19, %v393_v19 }
  0x9e   : > { %v396_v13 = vadd.f32 %v395_v10, %v394_v9 }
  0xa0   : > { %v398_v15 = vadd.f32 %v397_v20, %v396_v13 }
  0xa1   : > { %v698_v23 = vpop.eup %697 }
  0xa2   : > { %v399_v21 = vmax.f32 %v398_v15, 1e-24  ;;  %v343_v28 = vmul.f32 %v698_v23, %v333_v37  ;;  %v344_v30 = vmul.f32 %v698_v23, %v334_v38  ;;  %v345_v31 = vmul.f32 %v698_v23, %v335_v45 }
  0xa3   : > { %v700_v24 = vpop.eup %699 }
  0xa4   : > { %701 = vrsqrt.f32 %v399_v21  ;;  %v356_v32 = vmul.f32 %v700_v24, %v346_v40  ;;  %v357_v34 = vmul.f32 %v700_v24, %v347_v41  ;;  %v358_v44 = vmul.f32 %v700_v24, %v348_v48 }
  0xae   : > { %v702_v29 = vpop.eup %701 }
  0xaf   : > { %v401_v35 = vmul.f32 %v702_v29, %v387_v16  ;;  %v402_v39 = vmul.f32 %v702_v29, %v390_v17  ;;  %v403_v43 = vmul.f32 %v702_v29, %v393_v19 }
  0xb1   : > { %v405_v46 = vmul.f32 %v401_v35, %v330_v25  ;;  %v406_v47 = vmul.f32 %v402_v39, %v331_v26  ;;  %v408_v49 = vmul.f32 %v403_v43, %v332_v27  ;;  %v413_v50 = vmul.f32 %v401_v35, %v343_v28 }
  0xb2   : > { %v414_v33 = vmul.f32 %v402_v39, %v344_v30  ;;  %v416_v36 = vmul.f32 %v403_v43, %v345_v31  ;;  %v422_v42 = vmul.f32 %v401_v35, %v356_v32  ;;  %v423_v37 = vmul.f32 %v402_v39, %v357_v34 }
  0xb3   : > { %v407_v51 = vadd.f32 %v406_v47, %v405_v46  ;;  %v425_v38 = vmul.f32 %v403_v43, %v358_v44 }
  0xb4   : > { %v415_v45 = vadd.f32 %v414_v33, %v413_v50  ;;  %v424_v40 = vadd.f32 %v423_v37, %v422_v42 }
  0xb5   : > { %v409_v41 = vadd.f32 %v408_v49, %v407_v51 }
  0xb6   : > { %v417_v48 = vadd.f32 %v416_v36, %v415_v45  ;;  %v426_v53 = vadd.f32 %v425_v38, %v424_v40 }
  0xb7   : > { %v410_v54 = vand.u32 2147483647, %v409_v41 }
  0xb8   : > { %v418_v55 = vand.u32 2147483647, %v417_v48  ;;  %v427_v56 = vand.u32 2147483647, %v426_v53 }
  0xb9   : > { %v411_v57 = vmul.f32 %v410_v54, %v404_v52 }
  0xba   : > { %v419_v58 = vmul.f32 %v418_v55, %v404_v52  ;;  %v428_v59 = vmul.f32 %v427_v56, %v404_v52 }
  0xbb   : > { %412 = vst [vmem:[%s285_s10] sm:$0xff] %v411_v57 }
  0xbc   : > { %603 = vst [vmem:[%s285_s10 + $0x8] sm:$0xff] %v419_v58  ;;  %604 = vst [vmem:[%s285_s10 + $0x10] sm:$0xff] %v428_v59 }
  0xbd   : > { %806 = shalt.err (!%p803_p13)
}
  0xbe   : > { %s807_s28 = scalar_lea.hbm %s1136_s29, 384  ;;  %s811_s14 = scalar_lea.hbm %s1188_s3, 768 }
  0xbf   : > { %p808_p11 = scmp.ne.s32.totalorder %s1136_s29, %s807_s28  ;;  %p812_p7 = scmp.lt.u32.totalorder %s1136_s29, %s1188_s3 }
  0xc0   : > { %p813_p3 = scmp.lt.u32.totalorder %s811_s14, %s807_s28  ;;  %p815_p0 = scmp.lt.u32.totalorder %s807_s28, %s1136_s29 }
  0xc1   : > { %p809_p2 = pnand %p808_p11, %p1222_p10 }
  0xc2   : > { %p814_p4 = por %p813_p3, %p812_p7 }
  0xc3   : > { %p810_p5 = pneg %p809_p2 }
  0xc4   : > { %p816_p8 = por %p815_p0, %p814_p4 }
  0xc6   : > { %p817_p9 = pnand %p816_p8, %p810_p5 }
  0xc8   : > { %820 = shalt.err (!%p817_p9)
}
  0xc9   : > { %s887_s27 = smov 128   ;;  %s888_s4 = smov 8  }
  0xca   : > { %621 = dma.vmem_to_hbm [thread:$0]  (%p1222_p10), %s1131_s19, 384, %s1136_s29, %s432_s15, %s887_s27, %s887_s27, %s888_s4  }
  0xcb PF: > { %s1223_s11 = sld [smem:[#allocation16_spill]]  ;;  %s1224_s21 = sld [smem:[#allocation13_spill]] }
  0xcc   : > { %s461_s18 = sand.u32 1, %s859_s12  }
  0xcd   : > { %s462_s24 = scalar_lea.sflag [#allocation4], %s461_s18 }
  0xd1   : > { %p1225_p12 = scmp.ne.s32.totalorder %s1223_s11, 0  ;;  %p1226_p1 = scmp.ge.s32.totalorder %s1224_s21, 2 }
  0xd3   : > { %p634_p6 = pnand %p1226_p1, %p1225_p12 }
  0xd5   : > { %854 = dma.done.wait (!%p634_p6), %s462_s24, 384  }
  0xd6   : > { %856 = vsyncadd (!%p634_p6), %s462_s24, 4294966912  ;;  %s22_s17 = sadd.s32 1, %s1224_s21   ;;  %s1227_s9 = sld [smem:[#allocation12_spill]] }
  0xd7   : > { %p19_p13 = scmp.ge.s32.totalorder %s22_s17, 4   ;;  %s1228_s14 = sld [smem:[#allocation15_spill]] }
  0xd8   : > { %s1229_s25 = sld [smem:[#allocation14_spill]]  ;;  %s1230_s12 = smov %s863_s13 }
  0xd9   : > { %s1232_s15 = smov %s875_s16  ;;  %21 = sbr.rel (!%p19_p13) target bundleno = 11 (0xb), region = 119 }
  0xdc   : > { %s1231_s13 = smov %s1227_s9 }
  0xde   : > { %s1233_s16 = smov %s1229_s25 }
  0xe0   :  { %467 = vsyncpa [#allocation3], 1 }
  0xe1   :  { %469 = vsyncpa [#allocation3 + $0x1], 1 }
  0xe2   :  { %470 = vsyncpa [#allocation6], 1 }
  0xe3   :  { %472 = vsyncpa [#allocation6 + $0x1], 1 }
  0xe4   :  { %473 = vsyncpa [#allocation4], 1 }
  0xe5   :  { %475 = vsyncpa [#allocation4 + $0x1], 1 }

</bundles_post_ra>
